<compile_context>
chip_gen: v6e
topology: v6e:2x2x1
jax: 0.10.0
libtpu: 0.0.40
codegen_flags: <defaults>
</compile_context>

<pallas_src>
import numpy as np
import jax
import jax.numpy as jnp
from jax.experimental import pallas as pl
from jax.experimental.pallas import tpu as pltpu


def _round_up(n, m):
    return ((n + m - 1) // m) * m


# ----------------------------------------------------------------------------- kernels
def _precompute_kernel(xp_ref, w1_ref, b1_ref, w2a_ref, pre2_ref):
    """Context-independent per-stage work, hoisted out of the recurrence.

    grid = (S,), axis "parallel" (stages independent).

    xp_ref   : (T*B, pooled)     compute dtype  (pooled x, identical for all stages)
    w1_ref   : (1, pooled, h1)   compute dtype  (this stage's fc_h1 weight)
    b1_ref   : (1, 1, h1)        f32
    w2a_ref  : (1, h1, h2_pad)   compute dtype  (fc_h2 rows acting on h1, 0-padded)
    pre2_ref : (1, T*B, h2_pad)  f32  -> relu(pool(x) @ w1 + b1) @ w2a
    """
    cdt = w1_ref.dtype
    h1 = jnp.dot(xp_ref[...], w1_ref[0], preferred_element_type=jnp.float32)
    h1 = jnp.maximum(h1 + b1_ref[0], 0.0)
    pre2_ref[0] = jnp.dot(h1.astype(cdt), w2a_ref[0],
                          preferred_element_type=jnp.float32)


def _recurrence_kernel(pre2_ref, w2b_ref, b_ref, wh_ref, out_ref, ctx_ref):
    """Sequential (stage, time) recurrence; context kept in VMEM scratch.

    grid = (S, T), both "arbitrary" (true sequential dependency via context).

    pre2_ref : (1, 1, B, h2_pad)      f32  precomputed relu(x@w1+b1)@w2a for (s,t)
    w2b_ref  : (1, nsnc, h2_pad)      compute dtype (fc_h2 rows acting on context)
    b_ref    : (1, 2, bias_w)         f32  row0 = b2 (padded), row1 = fused head bias
    wh_ref   : (1, h2_pad, head_pad)  compute dtype  [w_ctx | w_dist | w_aoa | 0-pad]
    out_ref  : (1, 1, B, head_pad)    f32  [ctx | dist | aoa | pad]
    ctx_ref  : (B, nsnc)              f32  VMEM scratch carried across grid steps
    """
    s, t = pl.program_id(0), pl.program_id(1)

    @pl.when((s == 0) & (t == 0))
    def _():
        ctx_ref[...] = jnp.zeros_like(ctx_ref)

    cdt = w2b_ref.dtype
    b = b_ref[0]                                   # (2, bias_w) f32
    pre2 = pre2_ref[0, 0]                          # (B, h2_pad) f32
    ctx = ctx_ref[...].astype(cdt)                 # (B, nsnc)

    # h2 = relu(concat(h1, ctx) @ W2 + b2)  ==  relu(pre2 + ctx @ W2b + b2)
    h2 = pre2 + jnp.dot(ctx, w2b_ref[0], preferred_element_type=jnp.float32)
    h2 = jnp.maximum(h2 + b[0:1, :h2.shape[-1]], 0.0)

    # single lane-dense fused-head matmul: [ctx | dist | aoa | pad]
    out = jnp.dot(h2.astype(cdt), wh_ref[0], preferred_element_type=jnp.float32)
    out = out + b[1:2, :out.shape[-1]]

    out_ref[0, 0] = out
    ctx_ref[...] = out[:, :ctx_ref.shape[-1]]      # context head is lane-0 aligned


# ----------------------------------------------------------------------------- params
def init_raw_params(key, *, C, H, W, p, h1_hidden, h2_hidden, output_dim, ns, nc):
    """PyTorch nn.Linear-style init (uniform +-1/sqrt(fan_in)); weights stored (in, out)."""
    Hp, Wp = H // p, W // p
    pooled = C * Hp * Wp
    ks = jax.random.split(key, 10)

    def lin(kw, kb, fin, fout):
        bound = 1.0 / np.sqrt(fin)
        w = jax.random.uniform(kw, (fin, fout), jnp.float32, -bound, bound)
        b = jax.random.uniform(kb, (1, fout), jnp.float32, -bound, bound)
        return w, b

    w1, b1 = lin(ks[0], ks[1], pooled, h1_hidden)
    w2, b2 = lin(ks[2], ks[3], h1_hidden + ns * nc, h2_hidden)
    wd, bd = lin(ks[4], ks[5], h2_hidden, output_dim)
    wa, ba = lin(ks[6], ks[7], h2_hidden, output_dim)
    wc, bc = lin(ks[8], ks[9], h2_hidden, ns * nc)
    return dict(w1=w1, b1=b1, w2=w2, b2=b2, wd=wd, bd=bd, wa=wa, ba=ba, wc=wc, bc=bc,
                C=C, H=H, W=W, p=p, ns=ns, nc=nc)


def prepare_stacked_params(raw_list, *, compute_dtype=jnp.bfloat16):
    """Stack per-stage params on a leading S axis; split fc_h2, pad h2 path to 128
    lanes, fuse+pad the heads ([ctx|dist|aoa]), pack the two recurrence biases."""
    r0 = raw_list[0]
    C, H, W, p, ns, nc = r0["C"], r0["H"], r0["W"], r0["p"], r0["ns"], r0["nc"]
    h1 = r0["w1"].shape[1]
    h2 = r0["w2"].shape[1]
    od = r0["wd"].shape[1]
    nsnc = ns * nc
    h2_pad = _round_up(h2, 128)
    head_dim = nsnc + 2 * od
    head_pad = _round_up(head_dim, 128)
    bias_w = max(h2_pad, head_pad)
    cd = compute_dtype

    w1s, b1s, w2as, w2bs, whs, bps = [], [], [], [], [], []
    for r in raw_list:
        w2a = jnp.pad(r["w2"][:h1, :], ((0, 0), (0, h2_pad - h2)))
        w2b = jnp.pad(r["w2"][h1:, :], ((0, 0), (0, h2_pad - h2)))
        # fused heads, lane order [context | dist | aoa | pad] (context lane-0 aligned)
        wh = jnp.concatenate([r["wc"], r["wd"], r["wa"]], axis=1)
        wh = jnp.pad(wh, ((0, h2_pad - h2), (0, head_pad - head_dim)))
        bh = jnp.concatenate([r["bc"], r["bd"], r["ba"]], axis=1)
        bh = jnp.pad(bh, ((0, 0), (0, head_pad - head_dim)))
        b2 = jnp.pad(r["b2"], ((0, 0), (0, h2_pad - h2)))
        bp = jnp.concatenate([jnp.pad(b2, ((0, 0), (0, bias_w - h2_pad))),
                              jnp.pad(bh, ((0, 0), (0, bias_w - head_pad)))], axis=0)
        w1s.append(r["w1"]); b1s.append(r["b1"])
        w2as.append(w2a); w2bs.append(w2b); whs.append(wh); bps.append(bp)

    return dict(
        w1=jnp.stack(w1s).astype(cd),                 # (S, pooled, h1)
        b1=jnp.stack(b1s).astype(jnp.float32),        # (S, 1, h1)
        w2a=jnp.stack(w2as).astype(cd),               # (S, h1, h2_pad)
        w2b=jnp.stack(w2bs).astype(cd),               # (S, nsnc, h2_pad)
        w_heads=jnp.stack(whs).astype(cd),            # (S, h2_pad, head_pad)
        b_pack=jnp.stack(bps).astype(jnp.float32),    # (S, 2, bias_w)
        C=C, H=H, W=W, p=p, ns=ns, nc=nc, nsnc=nsnc,
        output_dim=od, h1=h1, h2_pad=h2_pad, head_pad=head_pad)


# ----------------------------------------------------------------------------- wrapper
def multi_stage_forward(x_seq, sp):
    """== PyTorch MultiStageRNN.forward.  x_seq: (B, T, C, H, W) f32.
    Returns a list of (dist_all, aoa_all) per stage, each (B, T, output_dim)."""
    B, T, C, H, W = x_seq.shape
    p = sp["p"]
    assert H % p == 0 and W % p == 0, "AvgPool2d truncation for non-divisible H/W not supported"
    Hp, Wp = H // p, W // p
    pooled = C * Hp * Wp
    S = sp["w1"].shape[0]
    h1 = sp["h1"]
    h2_pad, head_pad = sp["h2_pad"], sp["head_pad"]
    nsnc, od = sp["nsnc"], sp["output_dim"]
    bias_w = sp["b_pack"].shape[-1]
    cdt = sp["w1"].dtype

    # AvgPool2d(p,p) done ONCE for the whole sequence (stage/context independent);
    # cuts x/w1 DMA traffic by p^2 vs. folding the pool into fc_h1.
    xp = x_seq.reshape(B, T, C, Hp, p, Wp, p).mean(axis=(4, 6))       # (B,T,C,Hp,Wp)
    xp = jnp.transpose(xp, (1, 0, 2, 3, 4)).reshape(T * B, pooled).astype(cdt)

    # ---- kernel A: stage-parallel precompute of relu(pool(x)@W1 + b1) @ W2a ----
    pre2 = pl.pallas_call(
        _precompute_kernel,
        out_shape=jax.ShapeDtypeStruct((S, T * B, h2_pad), jnp.float32),
        grid_spec=pltpu.PrefetchScalarGridSpec(
            num_scalar_prefetch=0, grid=(S,),
            in_specs=[
                pl.BlockSpec((T * B, pooled), lambda s: (0, 0)),     # shared across stages
                pl.BlockSpec((1, pooled, h1), lambda s: (s, 0, 0)),
                pl.BlockSpec((1, 1, h1), lambda s: (s, 0, 0)),
                pl.BlockSpec((1, h1, h2_pad), lambda s: (s, 0, 0)),
            ],
            out_specs=pl.BlockSpec((1, T * B, h2_pad), lambda s: (s, 0, 0))),
        compiler_params=pltpu.CompilerParams(
            dimension_semantics=("parallel",)),        # v7x: both TCs split the stage axis
    )(xp, sp["w1"], sp["b1"], sp["w2a"])
    pre2 = pre2.reshape(S, T, B, h2_pad)               # free: identical row-major layout

    # ---- kernel B: the fused (stage, time) recurrence; context stays in VMEM ----
    out = pl.pallas_call(
        _recurrence_kernel,
        out_shape=jax.ShapeDtypeStruct((S, T, B, head_pad), jnp.float32),
        grid_spec=pltpu.PrefetchScalarGridSpec(
            num_scalar_prefetch=0, grid=(S, T),
            in_specs=[
                pl.BlockSpec((1, 1, B, h2_pad), lambda s, t: (s, t, 0, 0)),
                # stage weights/biases: same block for all t -> DMA only on stage change
                pl.BlockSpec((1, nsnc, h2_pad), lambda s, t: (s, 0, 0)),
                pl.BlockSpec((1, 2, bias_w), lambda s, t: (s, 0, 0)),
                pl.BlockSpec((1, h2_pad, head_pad), lambda s, t: (s, 0, 0)),
            ],
            out_specs=pl.BlockSpec((1, 1, B, head_pad), lambda s, t: (s, t, 0, 0)),
            scratch_shapes=[pltpu.VMEM((B, nsnc), jnp.float32)]),     # recurrent context
        compiler_params=pltpu.CompilerParams(
            dimension_semantics=("arbitrary", "arbitrary")),          # true recurrence
    )(pre2, sp["w2b"], sp["b_pack"], sp["w_heads"])

    # slice the fused heads: [ctx | dist | aoa | pad]
    dist = jnp.transpose(out[:, :, :, nsnc:nsnc + od], (0, 2, 1, 3))          # (S,B,T,od)
    aoa = jnp.transpose(out[:, :, :, nsnc + od:nsnc + 2 * od], (0, 2, 1, 3))  # (S,B,T,od)
    return [(dist[s], aoa[s]) for s in range(S)]


# ----------------------------------------------------------------------------- references
def _reference_module(x_seq, raw_list):
    """Pure-f32 jnp mirror of the PyTorch MultiStageRNN (unfused module semantics)."""
    B, T = x_seq.shape[:2]
    ns, nc = raw_list[0]["ns"], raw_list[0]["nc"]
    context = jnp.zeros((B, ns * nc), jnp.float32)
    outputs = []
    for r in raw_list:
        p = r["p"]
        dist_l, aoa_l = [], []
        for t in range(T):
            x = x_seq[:, t]
            Bc, C, H, W = x.shape
            pooledx = x.reshape(Bc, C, H // p, p, W // p, p).mean(axis=(3, 5))
            xf = pooledx.reshape(Bc, -1)
            h1 = jax.nn.relu(xf @ r["w1"] + r["b1"])
            h2 = jax.nn.relu(jnp.concatenate([h1, context], axis=1) @ r["w2"] + r["b2"])
            dist = h2 @ r["wd"] + r["bd"]
            aoa = h2 @ r["wa"] + r["ba"]
            context = h2 @ r["wc"] + r["bc"]
            dist_l.append(dist[:, None]); aoa_l.append(aoa[:, None])
        outputs.append((jnp.concatenate(dist_l, 1), jnp.concatenate(aoa_l, 1)))
    return outputs


def _reference_matched(x_seq, sp):
    """Plain-jnp mirror of the kernels' exact math/dtypes (validates the bf16 path)."""
    B, T = x_seq.shape[:2]
    C, H, W, p = sp["C"], sp["H"], sp["W"], sp["p"]
    nsnc, od = sp["nsnc"], sp["output_dim"]
    cdt = sp["w1"].dtype
    Hp, Wp = H // p, W // p
    xp = x_seq.reshape(B, T, C, Hp, p, Wp, p).mean(axis=(4, 6)).reshape(B, T, -1).astype(cdt)
    S = sp["w1"].shape[0]
    h2_pad = sp["h2_pad"]
    context = jnp.zeros((B, nsnc), jnp.float32)
    outputs = []
    for s in range(S):
        b = sp["b_pack"][s]
        dist_l, aoa_l = [], []
        for t in range(T):
            h1 = jnp.dot(xp[:, t], sp["w1"][s], preferred_element_type=jnp.float32)
            h1 = jnp.maximum(h1 + sp["b1"][s], 0.0)
            pre2 = jnp.dot(h1.astype(cdt), sp["w2a"][s], preferred_element_type=jnp.float32)
            h2 = pre2 + jnp.dot(context.astype(cdt), sp["w2b"][s],
                                preferred_element_type=jnp.float32)
            h2 = jnp.maximum(h2 + b[0:1, :h2_pad], 0.0)
            out = jnp.dot(h2.astype(cdt), sp["w_heads"][s], preferred_element_type=jnp.float32)
            out = out + b[1:2, :out.shape[-1]]
            context = out[:, :nsnc]
            dist_l.append(out[:, None, nsnc:nsnc + od])
            aoa_l.append(out[:, None, nsnc + od:nsnc + 2 * od])
        outputs.append((jnp.concatenate(dist_l, 1), jnp.concatenate(aoa_l, 1)))
    return outputs


# ----------------------------------------------------------------------------- main
if __name__ == "__main__":
    # Small shapes consistent with the module (scaled down from 128x128 / 100 stages).
    batch_size = 2
    seq_len = 2
    num_stages = 4
    input_channels = 1
    input_height = 32
    input_width = 32
    pooling_size = 4
    h1_hidden = 128
    h2_hidden = 64
    output_dim = 1
    ns, nc = 4, 8

    key = jax.random.PRNGKey(0)
    kx, kparams = jax.random.split(key)
    x_seq = jax.random.normal(
        kx, (batch_size, seq_len, input_channels, input_height, input_width),
        dtype=jnp.float32)

    raw_list = [init_raw_params(k, C=input_channels, H=input_height, W=input_width,
                                p=pooling_size, h1_hidden=h1_hidden,
                                h2_hidden=h2_hidden, output_dim=output_dim,
                                ns=ns, nc=nc)
                for k in jax.random.split(kparams, num_stages)]

    # --- f32 kernel run: must reproduce the PyTorch-module semantics tightly ---
    sp_f32 = prepare_stacked_params(raw_list, compute_dtype=jnp.float32)
    out_f32 = multi_stage_forward(x_seq, sp_f32)
    jax.block_until_ready(out_f32)
    ref_mod = _reference_module(x_seq, raw_list)
    for (d, a), (rd, ra) in zip(out_f32, ref_mod):
        assert d.shape == (batch_size, seq_len, output_dim)
        assert a.shape == (batch_size, seq_len, output_dim)
        np.testing.assert_allclose(np.asarray(d), np.asarray(rd), rtol=1e-4, atol=1e-4)
        np.testing.assert_allclose(np.asarray(a), np.asarray(ra), rtol=1e-4, atol=1e-4)

    # --- bf16 kernel run (performance path): matches a dtype-matched jnp reference ---
    sp_bf16 = prepare_stacked_params(raw_list, compute_dtype=jnp.bfloat16)
    out_bf16 = multi_stage_forward(x_seq, sp_bf16)
    jax.block_until_ready(out_bf16)
    ref_bf16 = _reference_matched(x_seq, sp_bf16)
    for (d, a), (rd, ra) in zip(out_bf16, ref_bf16):
        np.testing.assert_allclose(np.asarray(d), np.asarray(rd), rtol=5e-3, atol=5e-3)
        np.testing.assert_allclose(np.asarray(a), np.asarray(ra), rtol=5e-3, atol=5e-3)

    print("KERNEL_OK")
</pallas_src>

<mosaic_0001>
module attributes {stable_mosaic.version = 11 : i64} {
  func.func @_precompute_kernel(%arg0: i32, %arg1: memref<4x64xf32, #tpu.memory_space<vmem>>, %arg2: memref<1x64x128xf32, #tpu.memory_space<vmem>>, %arg3: memref<1x1x128xf32, #tpu.memory_space<vmem>>, %arg4: memref<1x128x128xf32, #tpu.memory_space<vmem>>, %arg5: memref<1x4x128xf32, #tpu.memory_space<vmem>>) attributes {dimension_semantics = [#tpu.dimension_semantics<parallel>], iteration_bounds = array<i64: 4>, scalar_prefetch = 0 : i64, scratch_operands = 0 : i64, tpu.core_type = #tpu.core_type<tc>, window_params = [{pipeline_mode = #tpu.pipeline_mode<synchronous>, transform_indices = @transform_0, window_bounds = array<i64: 4, 64>}, {transform_indices = @transform_1, window_bounds = array<i64: 1, 64, 128>}, {transform_indices = @transform_2, window_bounds = array<i64: 1, 1, 128>}, {transform_indices = @transform_3, window_bounds = array<i64: 1, 128, 128>}, {transform_indices = @transform_4, window_bounds = array<i64: 1, 4, 128>}]} {
    %c0 = arith.constant 0 : index
    %c0_0 = arith.constant 0 : index
    %0 = vector.load %arg1[%c0, %c0_0] : memref<4x64xf32, #tpu.memory_space<vmem>>, vector<4x64xf32>
    %c0_1 = arith.constant 0 : index
    %c0_2 = arith.constant 0 : index
    %c0_3 = arith.constant 0 : index
    %1 = vector.load %arg2[%c0_1, %c0_2, %c0_3] : memref<1x64x128xf32, #tpu.memory_space<vmem>>, vector<1x64x128xf32>
    %2 = vector.shape_cast %1 : vector<1x64x128xf32> to vector<64x128xf32>
    %cst = arith.constant dense<0.000000e+00> : vector<4x128xf32>
    %3 = tpu.matmul %0, %2, %cst {dimension_numbers = #tpu.dot_dimension_numbers<[1], [0], [0], [1], [0, 0, 1, 1], [], []>} : vector<4x64xf32>, vector<64x128xf32>, vector<4x128xf32> -> vector<4x128xf32>
    %c0_4 = arith.constant 0 : index
    %c0_5 = arith.constant 0 : index
    %c0_6 = arith.constant 0 : index
    %4 = vector.load %arg3[%c0_4, %c0_5, %c0_6] : memref<1x1x128xf32, #tpu.memory_space<vmem>>, vector<1x1x128xf32>
    %5 = vector.shape_cast %4 : vector<1x1x128xf32> to vector<1x128xf32>
    %6 = vector.broadcast %5 : vector<1x128xf32> to vector<4x128xf32>
    %7 = arith.addf %3, %6 : vector<4x128xf32>
    %cst_7 = arith.constant 0.000000e+00 : f32
    %8 = vector.broadcast %cst_7 : f32 to vector<4x128xf32>
    %9 = arith.maximumf %7, %8 : vector<4x128xf32>
    %c0_8 = arith.constant 0 : index
    %c0_9 = arith.constant 0 : index
    %c0_10 = arith.constant 0 : index
    %10 = vector.load %arg4[%c0_8, %c0_9, %c0_10] : memref<1x128x128xf32, #tpu.memory_space<vmem>>, vector<1x128x128xf32>
    %11 = vector.shape_cast %10 : vector<1x128x128xf32> to vector<128x128xf32>
    %cst_11 = arith.constant dense<0.000000e+00> : vector<4x128xf32>
    %12 = tpu.matmul %9, %11, %cst_11 {dimension_numbers = #tpu.dot_dimension_numbers<[1], [0], [0], [1], [0, 0, 1, 1], [], []>} : vector<4x128xf32>, vector<128x128xf32>, vector<4x128xf32> -> vector<4x128xf32>
    %c0_12 = arith.constant 0 : index
    %c0_13 = arith.constant 0 : index
    %c0_14 = arith.constant 0 : index
    %13 = vector.load %arg5[%c0_12, %c0_13, %c0_14] : memref<1x4x128xf32, #tpu.memory_space<vmem>>, vector<1x4x128xf32>
    %14 = vector.shape_cast %13 : vector<1x4x128xf32> to vector<4x128xf32>
    %15 = vector.shape_cast %12 : vector<4x128xf32> to vector<1x4x128xf32>
    tpu.vector_store %arg5[%c0_12, %c0_13, %c0_14], %15 {strides = array<i32>} : memref<1x4x128xf32, #tpu.memory_space<vmem>>, vector<1x4x128xf32>,
    return
  }
  func.func @transform_0(%arg0: i32) -> (i32, i32) {
    %c0_i32 = arith.constant 0 : i32
    %c0_i32_0 = arith.constant 0 : i32
    %c0_i32_1 = arith.constant 0 : i32
    return %c0_i32, %c0_i32_0 : i32, i32
  }
  func.func @transform_1(%arg0: i32) -> (i32, i32, i32) {
    %c0_i32 = arith.constant 0 : i32
    %c0_i32_0 = arith.constant 0 : i32
    %c0_i32_1 = arith.constant 0 : i32
    return %arg0, %c0_i32, %c0_i32_0 : i32, i32, i32
  }
  func.func @transform_2(%arg0: i32) -> (i32, i32, i32) {
    %c0_i32 = arith.constant 0 : i32
    %c0_i32_0 = arith.constant 0 : i32
    %c0_i32_1 = arith.constant 0 : i32
    return %arg0, %c0_i32, %c0_i32_0 : i32, i32, i32
  }
  func.func @transform_3(%arg0: i32) -> (i32, i32, i32) {
    %c0_i32 = arith.constant 0 : i32
    %c0_i32_0 = arith.constant 0 : i32
    %c0_i32_1 = arith.constant 0 : i32
    return %arg0, %c0_i32, %c0_i32_0 : i32, i32, i32
  }
  func.func @transform_4(%arg0: i32) -> (i32, i32, i32) {
    %c0_i32 = arith.constant 0 : i32
    %c0_i32_0 = arith.constant 0 : i32
    %c0_i32_1 = arith.constant 0 : i32
    return %arg0, %c0_i32, %c0_i32_0 : i32, i32, i32
  }
}

</mosaic_0001>

<bundles_post_ra>
// kernel: tpu_custom_call.1
= control target key start
LH: loop header
LB: loop body
LE: loop exit
PB: predicated region body
PF: predicated region fallthrough
CT: control target
= control target key end

     0   :  { %s1327_s0 = inlined_call_operand.hbm [shape: f32[4,64], index: 0, kind: input, shape index: {}]   ;;  %s1328_s1 = inlined_call_operand.hbm [shape: f32[4,64,128], index: 1, kind: input, shape index: {}]   ;;  %s1329_s2 = inlined_call_operand.hbm [shape: f32[4,1,128], index: 2, kind: input, shape index: {}]   ;;  %s1330_s3 = inlined_call_operand.hbm [shape: f32[4,128,128], index: 3, kind: input, shape index: {}]   ;;  %s1331_s4 = inlined_call_operand.hbm [shape: f32[4,4,128], index: 4, kind: output, shape index: {}]  }
   0x1   :  { %1341 = sst [smem:[#allocation17_spill]] %s1328_s1 }
   0x2   :  { %9 = vsyncpa [#allocation3], 0 }
   0x3   :  { %10 = vsyncpa [#allocation6], 0 }
   0x4   :  { %12 = vsyncpa [#allocation6 + $0x1], 0 }
   0x5   :  { %13 = vsyncpa [#allocation9], 0 }
   0x6   :  { %15 = vsyncpa [#allocation9 + $0x1], 0 }
   0x7   :  { %16 = vsyncpa [#allocation4], 0 }
   0x8   :  { %18 = vsyncpa [#allocation4 + $0x1], 0  ;;  %s1007_s15 = smov 0   ;;  %s1009_s16 = smov 0  }
   0x9   :  { %s1011_s17 = smov 0   ;;  %s1013_s18 = smov 0  }
   0xa LB: > { %1342 = sst [smem:[#allocation15_spill]] %s967_s17  ;;  %s1028_s19 = sadd.s32 1, %s971_s18   ;;  %s971_s18 = sphi %s1013_s18, %s1366_s18   ;;  %s967_s17 = sphi %s1011_s17, %s1363_s17   ;;  %s963_s16 = sphi %s1009_s16, %s1365_s16   ;;  %s959_s15 = sphi %s1007_s15, %s1364_s15  }
   0xb   : > { %s52_s20 = sadd.s32 1, %s967_s17  ;;  %s49_s21 = ssub.s32 %s971_s18, %s1028_s19 }
   0xc   : > { %p1332_p0 = scmp.ne.s32.totalorder %s967_s17, %s963_s16  ;;  %p50_p1 = scmp.eq.s32.totalorder %s49_s21, 0 }
   0xd   : > { %p60_p2 = scmp.eq.s32.totalorder %s971_s18, 0  ;;  %p749_p3 = scmp.lt.s32.totalorder %s971_s18, 4 }
   0xe   : > { %s1038_s22 = scalar_select %p50_p1, %s967_s17, %s52_s20  }
   0xf   : > { %p61_p4 = por %p60_p2, %p1332_p0  ;;  %s178_s23 = sand.u32 1, %s971_s18  }
  0x10   : > { %1343 = sst [smem:[#allocation16_spill]] %s1038_s22  ;;  %s1045_s24 = sand.u32 1, %s967_s17  }
  0x11   : > { %s618_s25 = sshll.u32 %s1045_s24, 6  ;;  %s636_s26 = sshll.u32 %s971_s18, 10 }
  0x12   : > { %s1344_s1 = sld [smem:[#allocation17_spill]]  ;;  %s182_s30 = scalar_lea.vmem [#allocation5], %s618_s25 }
  0x13   : > { %s189_s5 = sshll.u32 %s182_s30, 4  ;;  %p1054_p5 = pnand %p749_p3, %p61_p4  ;;  %s1058_s5 = int_to_ptr.vmem [resolvable:$true] %s189_s5 }
  0x14   : > { %s1060_s7 = scalar_lea.sflag [#allocation6], %s178_s23 }
  0x15   : > { %p1066_p7 = pneg %p1054_p5 }
  0x18   : > { %s1052_s29 = scalar_lea.hbm %s1344_s1, %s636_s26  ;;  %s794_s12 = scalar_lea.hbm %s1344_s1, 4096 }
  0x19   : > { %s789_s8 = scalar_lea.hbm %s1052_s29, 1024  ;;  %p795_p10 = scmp.lt.s32.totalorder %s1052_s29, %s1344_s1 }
  0x1a   : > { %p790_p6 = scmp.ne.s32.totalorder %s1052_s29, %s789_s8  ;;  %p796_p11 = scmp.lt.s32.totalorder %s794_s12, %s789_s8 }
  0x1c   : > { %p792_p8 = pnand %p1066_p7, %p790_p6  ;;  %p797_p12 = por %p796_p11, %p795_p10 }
  0x1e   : > { %p793_p9 = pneg %p792_p8 }
  0x20   : > { %p798_p13 = pnand %p797_p12, %p793_p9 }
  0x22   : > { %801 = shalt.err (!%p798_p13)
}
  0x23   : > { %s802_s20 = scalar_lea.vmem %s1058_s5, 1024  ;;  %s973_s21 = smov [#allocation5]  }
  0x24   : > { %p803_p1 = scmp.ne.s32.totalorder %s1058_s5, %s802_s20  ;;  %s807_s23 = sshll.u32 %s973_s21, 4  ;;  %s808_s23 = int_to_ptr.vmem [resolvable:$false] %s807_s23 }
  0x25   : > { %s809_s25 = scalar_lea.vmem %s808_s23, 2048  ;;  %p810_p4 = scmp.lt.s32.totalorder %s1058_s5, %s808_s23 }
  0x26   : > { %p805_p2 = pnand %p803_p1, %p1066_p7  ;;  %p811_p6 = scmp.lt.s32.totalorder %s809_s25, %s802_s20 }
  0x28   : > { %p806_p3 = pneg %p805_p2  ;;  %p812_p8 = por %p811_p6, %p810_p4 }
  0x2a   : > { %p813_p0 = pnand %p812_p8, %p806_p3 }
  0x2c   : > { %816 = shalt.err (!%p813_p0)
}
  0x2d   : > { %s1333_s26 = smov 128   ;;  %s1334_s27 = smov 8  }
  0x2e   : > { %737 = dma.hbm_to_vmem [thread:$0]  (!%p1054_p5), %s1052_s29, 1024, %s1058_s5, %s1060_s7, %s1333_s26, %s1333_s26, %s1334_s27  }
  0x2f   : > { %s1093_s28 = sadd.s32 4294967295, %s971_s18   ;;  %s614_s30 = sadd.s32 4294967294, %s971_s18  }
  0x30   : > { %p65_p0 = scmp.ne.s32.totalorder %s963_s16, %s959_s15  ;;  %p1335_p9 = scmp.eq.s32.totalorder %s1093_s28, 0 }
  0x31   : > { %p141_p10 = scmp.eq.s32.totalorder %s1093_s28, 3  ;;  %p147_p11 = scmp.eq.s32.totalorder %s614_s30, 3 }
  0x32   : > { %p1102_p12 = por %p1335_p9, %p65_p0  ;;  %p615_p13 = scmp.ge.s32.totalorder %s971_s18, 1 }
  0x33   : > { %p1348_p1 = scmp.ne.s32.totalorder %s967_s17, %s963_s16  ;;  %p1114_p3 = por %p147_p11, %p65_p0 }
  0x34   : > { %s1347_s8 = scalar_select %p1102_p12, 1, 0 }
  0x35   : > { %p1110_p2 = por %p141_p10, %p1348_p1  ;;  %p154_p4 = scmp.lt.s32.totalorder %s971_s18, 5 }
  0x36   : > { %s1350_s5 = scalar_select %p1114_p3, 1, 0 }
  0x37   : > { %s1349_s29 = scalar_select %p1110_p2, 1, 0 }
  0x38   : > { %p1119_p6 = pnand %p615_p13, %p154_p4  ;;  %s976_s11 = smov [#allocation2]  }
  0x39   : > { %s167_s12 = sshll.u32 %s976_s11, 4  ;;  %s621_s13 = sshll.u32 %s971_s18, 4  ;;  %s1123_s12 = int_to_ptr.vmem [resolvable:$true] %s167_s12 }
  0x3a   : > { %s1351_s10 = scalar_select %p1119_p6, 1, 0 }
  0x3b   : > { %p730_p8 = pneg %p1119_p6  ;;  %s1131_s21 = scalar_lea.hbm %s1329_s2, %s621_s13 }
  0x3c   : > { %s202_s23 = scalar_lea.vmem [#allocation7], %s1045_s24  ;;  %s817_s11 = scalar_lea.hbm %s1131_s21, 16 }
  0x3d   : > { %s209_s25 = sshll.u32 %s202_s23, 4  ;;  %p1136_p0 = pnand %p730_p8, %p1335_p9  ;;  %s210_s25 = int_to_ptr.vmem [resolvable:$true] %s209_s25 }
  0x3e   : > { %p818_p10 = scmp.ne.s32.totalorder %s1131_s21, %s817_s11  ;;  %s822_s13 = scalar_lea.hbm %s1329_s2, 64 }
  0x3f   : > { %s1352_s30 = scalar_select %p1136_p0, 1, 0 }
  0x40   : > { %p820_p11 = pnand %p818_p10, %p1066_p7  ;;  %p823_p1 = scmp.lt.s32.totalorder %s1131_s21, %s1329_s2 }
  0x41   : > { %p824_p4 = scmp.lt.s32.totalorder %s822_s13, %s817_s11 }
  0x42   : > { %p821_p13 = pneg %p820_p11 }
  0x43   : > { %p825_p3 = por %p824_p4, %p823_p1 }
  0x45   : > { %p826_p8 = pnand %p825_p3, %p821_p13 }
  0x47   : > { %829 = shalt.err (!%p826_p8)
}
  0x48   : > { %s830_s23 = scalar_lea.vmem %s210_s25, 16  ;;  %s977_s1 = smov [#allocation7]  }
  0x49   : > { %p831_p9 = scmp.ne.s32.totalorder %s210_s25, %s830_s23  ;;  %s835_s22 = sshll.u32 %s977_s1, 4  ;;  %s836_s22 = int_to_ptr.vmem [resolvable:$false] %s835_s22 }
  0x4a   : > { %s837_s17 = scalar_lea.vmem %s836_s22, 32  ;;  %p838_p10 = scmp.lt.s32.totalorder %s210_s25, %s836_s22 }
  0x4b   : > { %p833_p2 = pnand %p831_p9, %p1066_p7  ;;  %p839_p11 = scmp.lt.s32.totalorder %s837_s17, %s830_s23 }
  0x4d   : > { %p834_p12 = pneg %p833_p2  ;;  %p840_p6 = por %p839_p11, %p838_p10 }
  0x4f   : > { %p841_p0 = pnand %p840_p6, %p834_p12 }
  0x51   : > { %844 = shalt.err (!%p841_p0)
}
  0x52   : > { %740 = dma.hbm_to_vmem [thread:$0]  (!%p1054_p5), %s1131_s21, 16, %s210_s25, %s1060_s7  }
  0x53   : > { %s622_s26 = sshll.u32 %s1045_s24, 7  ;;  %p1353_p9 = scmp.ne.s32.totalorder %s1352_s30, 0 }
  0x54   : > { %s856_s1 = scalar_lea.vmem %s1123_s12, 64  ;;  %p864_p12 = scmp.lt.s32.totalorder %s1123_s12, %s1123_s12 }
  0x55   : > { %p847_p2 = pneg %p1353_p9  ;;  %p857_p3 = scmp.ne.s32.totalorder %s1123_s12, %s856_s1 }
  0x56   : > { %p865_p6 = scmp.lt.s32.totalorder %s856_s1, %s856_s1 }
  0x57   : > { %p859_p13 = pnand %p857_p3, %p847_p2 }
  0x58   : > { %p866_p0 = por %p865_p6, %p864_p12 }
  0x59   : > { %p860_p1 = pneg %p859_p13 }
  0x5b   : > { %p867_p4 = pnand %p866_p0, %p860_p1 }
  0x5d   : > { %870 = shalt.err (!%p867_p4)
}
  0x5e   : > { %733 = dma.hbm_to_vmem [thread:$0]  (!%p1353_p9), %s1327_s0, 64, %s1123_s12, [#allocation3]  }
  0x5f   : > { %s637_s7 = sshll.u32 %s971_s18, 11  ;;  %s220_s11 = scalar_lea.vmem [#allocation8], %s622_s26 }
  0x60   : > { %s1174_s25 = scalar_lea.hbm %s1330_s3, %s637_s7  ;;  %s227_s14 = sshll.u32 %s220_s11, 4  ;;  %s1176_s14 = int_to_ptr.vmem [resolvable:$true] %s227_s14 }
  0x61   : > { %s217_s30 = scalar_lea.sflag [#allocation9], %s1045_s24  ;;  %s871_s13 = scalar_lea.hbm %s1174_s25, 2048 }
  0x62   : > { %p872_p8 = scmp.ne.s32.totalorder %s1174_s25, %s871_s13  ;;  %s876_s23 = scalar_lea.hbm %s1330_s3, 8192 }
  0x63   : > { %p877_p9 = scmp.lt.s32.totalorder %s1174_s25, %s1330_s3  ;;  %p878_p2 = scmp.lt.s32.totalorder %s876_s23, %s871_s13 }
  0x64   : > { %p874_p10 = pnand %p872_p8, %p1066_p7 }
  0x65   : > { %p879_p3 = por %p878_p2, %p877_p9 }
  0x66   : > { %p875_p11 = pneg %p874_p10 }
  0x68   : > { %p880_p13 = pnand %p879_p3, %p875_p11 }
  0x6a   : > { %883 = shalt.err (!%p880_p13)
}
  0x6b   : > { %s884_s24 = scalar_lea.vmem %s1176_s14, 2048  ;;  %s978_s26 = smov [#allocation8]  }
  0x6c   : > { %p885_p1 = scmp.ne.s32.totalorder %s1176_s14, %s884_s24  ;;  %s889_s22 = sshll.u32 %s978_s26, 4  ;;  %s890_s22 = int_to_ptr.vmem [resolvable:$false] %s889_s22 }
  0x6d   : > { %s891_s7 = scalar_lea.vmem %s890_s22, 4096  ;;  %p892_p0 = scmp.lt.s32.totalorder %s1176_s14, %s890_s22 }
  0x6e   : > { %p887_p12 = pnand %p885_p1, %p1066_p7  ;;  %p893_p4 = scmp.lt.s32.totalorder %s891_s7, %s884_s24 }
  0x70   : > { %p888_p6 = pneg %p887_p12  ;;  %p894_p8 = por %p893_p4, %p892_p0 }
  0x72   : > { %p895_p10 = pnand %p894_p8, %p888_p6 }
  0x74   : > { %898 = shalt.err (!%p895_p10)
}
  0x75   : > { %s1354_s27 = smov 8   ;;  %s1355_s21 = smov 128  }
  0x76   : > { %743 = dma.hbm_to_vmem [thread:$0]  (!%p1054_p5), %s1174_s25, 2048, %s1176_s14, %s217_s30, %s1355_s21, %s1355_s21, %s1354_s27  }
  0x77   : > { %p1356_p7 = scmp.ne.s32.totalorder %s1351_s10, 0 }
  0x78   : > { %p1357_p11 = scmp.eq.s32.totalorder (!%p1356_p7), %s1093_s28, 0 }
  0x79   : > { %239 = sbr.rel (%p1356_p7) target bundleno = 557 (0x22d), region = 36 }
  0x7e   : > { %942 = dma.done.wait (%p1357_p11), [#allocation3], 64   ;;  %p1358_p9 = pmov %p1357_p11 }
  0x7f   : > { %s245_s9 = sand.u32 1, %s1093_s28   ;;  %s1210_s6 = sand.u32 1, %s963_s16  }
  0x80   : > { %944 = vsyncadd (%p1358_p9), [#allocation3], 4294967232  ;;  %s627_s11 = sshll.u32 %s1210_s6, 6  ;;  %s246_s13 = scalar_lea.sflag [#allocation6], %s245_s9 }
  0x81   : > { %s1213_s12 = scalar_lea.vmem [#allocation5], %s627_s11  ;;  %p1359_p5 = scmp.ne.s32.totalorder %s1347_s8, 0 }
  0x83   : > { %946 = dma.done.wait (%p1359_p5), %s246_s13, 1040  }
  0x84   : > { %948 = vsyncadd (%p1359_p5), %s246_s13, 4294966256  ;;  %s628_s10 = sshll.u32 %s1210_s6, 7  ;;  %s257_s25 = scalar_lea.vmem [#allocation7], %s1210_s6 }
  0x85   : > { %s263_s14 = scalar_lea.sflag [#allocation9], %s1210_s6  ;;  %s1222_s30 = scalar_lea.vmem [#allocation8], %s628_s10 }
  0x86   : > { %950 = dma.done.wait (%p1359_p5), %s263_s14, 2048  }
  0x87   : > { %952 = vsyncadd (%p1359_p5), %s263_s14, 4294965248  ;;  %v979_v0 = vmov 0.0   ;;  %vm980_vm0 = vmmov 0   ;;  %v308_v1 = vld [vmem:[%s1213_s12 + $0x38] sm:$0xff]  ;;  %v307_v2 = vld [vmem:[%s1213_s12 + $0x30] sm:$0xff]  ;;  %vm316_vm1 = vcmask 523264  }
  0x88   : > { %664 = vmatprep.subr.mxu0 %v979_v0  ;;  %680 = vmatprep.mubr.msk.f32.mxu0 %vm980_vm0, %v979_v0  ;;  %v306_v3 = vld [vmem:[%s1213_s12 + $0x28] sm:$0xff]  ;;  %v406_v4 = vld [vmem:[%s1222_s30 + $0x78] sm:$0xff]  ;;  %v405_v5 = vld [vmem:[%s1222_s30 + $0x70] sm:$0xff]  ;;  %s629_s8 = sshll.u32 %s1210_s6, 2  ;;  %s633_s1 = sshll.u32 %s1093_s28, 6 }
  0x89   : > { %683 = vmatprep.subr.mxu1 %v979_v0  ;;  %715 = vmatprep.mubr.msk.f32.mxu1 %vm980_vm0, %v979_v0  ;;  %v305_v6 = vld [vmem:[%s1213_s12 + $0x20] sm:$0xff]  ;;  %v404_v7 = vld [vmem:[%s1222_s30 + $0x68] sm:$0xff]  ;;  %v304_v8 = vld [vmem:[%s1213_s12 + $0x18] sm:$0xff]  ;;  %s299_s20 = scalar_lea.vmem [#allocation10], %s629_s8  ;;  %s1287_s26 = scalar_lea.hbm %s1331_s4, %s633_s1 }
  0x8a   : > { %665 = vmatpush3.msra.mxu0 %v308_v1  ;;  %684 = vmatpush3.msra.mxu1 %v406_v4  ;;  %v403_v9 = vld [vmem:[%s1222_s30 + $0x60] sm:$0xff]  ;;  %v303_v10 = vld [vmem:[%s1213_s12 + $0x10] sm:$0xff]  ;;  %v402_v11 = vld [vmem:[%s1222_s30 + $0x58] sm:$0xff]  ;;  %s492_s23 = sshll.u32 %s299_s20, 4  ;;  %s479_s22 = scalar_lea.sflag [#allocation4], %s1210_s6  ;;  %s1282_s23 = int_to_ptr.vmem [resolvable:$true] %s492_s23 }
  0x8b   : > { %666 = vmatprep.subr.mxu0 %v979_v0  ;;  %685 = vmatprep.subr.mxu1 %v979_v0  ;;  %v302_v12 = vld [vmem:[%s1213_s12 + $0x8] sm:$0xff]  ;;  %v401_v13 = vld [vmem:[%s1222_s30 + $0x50] sm:$0xff]  ;;  %v301_v14 = vld [vmem:[%s1213_s12] sm:$0xff]  ;;  %s899_s7 = scalar_lea.vmem %s1282_s23, 64  ;;  %p1360_p3 = scmp.ne.s32.totalorder %s1349_s29, 0 }
  0x8c   : > { %667 = vmatpush3.msra.mxu0 %v307_v2  ;;  %686 = vmatpush3.msra.mxu1 %v405_v5  ;;  %v300_v15 = vld [vmem:[#allocation2] sm:$0xf]  ;;  %v400_v16 = vld [vmem:[%s1222_s30 + $0x48] sm:$0xff]  ;;  %v399_v17 = vld [vmem:[%s1222_s30 + $0x40] sm:$0xff]  ;;  %p900_p2 = scmp.ne.s32.totalorder %s1282_s23, %s899_s7  ;;  %s981_s28 = smov [#allocation10]  }
  0x8d   : > { %668 = vmatprep.subr.mxu0 %v979_v0  ;;  %687 = vmatprep.subr.mxu1 %v979_v0  ;;  %v398_v18 = vld [vmem:[%s1222_s30 + $0x38] sm:$0xff]  ;;  %v397_v19 = vld [vmem:[%s1222_s30 + $0x30] sm:$0xff]  ;;  %v396_v20 = vld [vmem:[%s1222_s30 + $0x28] sm:$0xff]  ;;  %s903_s27 = sshll.u32 %s981_s28, 4  ;;  %s904_s27 = int_to_ptr.vmem [resolvable:$false] %s903_s27 }
  0x8e   : > { %669 = vmatpush3.msra.mxu0 %v306_v3  ;;  %688 = vmatpush3.msra.mxu1 %v404_v7  ;;  %v395_v21 = vld [vmem:[%s1222_s30 + $0x20] sm:$0xff]  ;;  %v394_v22 = vld [vmem:[%s1222_s30 + $0x18] sm:$0xff]  ;;  %v393_v23 = vld [vmem:[%s1222_s30 + $0x10] sm:$0xff]  ;;  %p901_p13 = pnand %p900_p2, %p1360_p3  ;;  %s905_s21 = scalar_lea.vmem %s904_s27, 128 }
  0x8f   : > { %670 = vmatprep.subr.mxu0 %v979_v0  ;;  %689 = vmatprep.subr.mxu1 %v979_v0  ;;  %v392_v24 = vld [vmem:[%s1222_s30 + $0x8] sm:$0xff]  ;;  %v391_v25 = vld [vmem:[%s1222_s30] sm:$0xff]  ;;  %v630_v26 = vld [vmem:[%s257_s25] ss:$0 sm:$0xff]  ;;  %p906_p12 = scmp.lt.s32.totalorder %s1282_s23, %s904_s27  ;;  %p907_p6 = scmp.lt.s32.totalorder %s905_s21, %s899_s7 }
  0x90   : > { %671 = vmatpush3.msra.mxu0 %v305_v6  ;;  %690 = vmatpush3.msra.mxu1 %v403_v9  ;;  %p902_p1 = pneg %p901_p13 }
  0x91   : > { %672 = vmatprep.subr.mxu0 %v979_v0  ;;  %691 = vmatprep.subr.mxu1 %v979_v0  ;;  %p908_p0 = por %p907_p6, %p906_p12 }
  0x92   : > { %673 = vmatpush3.msra.mxu0 %v304_v8  ;;  %692 = vmatpush3.msra.mxu1 %v402_v11 }
  0x93   : > { %674 = vmatprep.subr.mxu0 %v979_v0  ;;  %693 = vmatprep.subr.mxu1 %v979_v0  ;;  %p909_p4 = pnand %p908_p0, %p902_p1 }
  0x94   : > { %675 = vmatpush3.msra.mxu0 %v303_v10  ;;  %694 = vmatpush3.msra.mxu1 %v401_v13 }
  0x95   : > { %676 = vmatprep.subr.mxu0 %v979_v0  ;;  %695 = vmatprep.subr.mxu1 %v979_v0 }
  0x96   : > { %677 = vmatpush3.msra.mxu0 %v302_v12  ;;  %696 = vmatpush3.msra.mxu1 %v400_v16 }
  0x97   : > { %678 = vmatprep.subr.mxu0 %v979_v0  ;;  %697 = vmatprep.subr.mxu1 %v979_v0 }
  0x98   : > { %679 = vmatpush3.msra.mxu0 %v301_v14  ;;  %698 = vmatpush3.msra.mxu1 %v399_v17 }
  0x99   : > { %681 = vmatmul.mubr.msk.f32.vlgmr.msra.gmra.mxu0 %vm316_vm1, %v300_v15  ;;  %699 = vmatprep.subr.mxu1 %v979_v0 }
  0x9a   : > { %700 = vmatpush3.msra.mxu1 %v398_v18 }
  0x9b   : > { %701 = vmatprep.subr.mxu1 %v979_v0 }
  0x9c   : > { %702 = vmatpush3.msra.mxu1 %v397_v19 }
  0x9d   : > { %703 = vmatprep.subr.mxu1 %v979_v0 }
  0x9e   : > { %704 = vmatpush3.msra.mxu1 %v396_v20 }
  0x9f   : > { %705 = vmatprep.subr.mxu1 %v979_v0 }
  0xa0   : > { %706 = vmatpush3.msra.mxu1 %v395_v21 }
  0xa1   : > { %707 = vmatprep.subr.mxu1 %v979_v0 }
  0xa2   : > { %708 = vmatpush3.msra.mxu1 %v394_v22 }
  0xa3   : > { %709 = vmatprep.subr.mxu1 %v979_v0 }
  0xa4   : > { %710 = vmatpush3.msra.mxu1 %v393_v23 }
  0xa5   : > { %711 = vmatprep.subr.mxu1 %v979_v0 }
  0xa6   : > { %712 = vmatpush3.msra.mxu1 %v392_v24 }
  0xa7   : > { %713 = vmatprep.subr.mxu1 %v979_v0 }
  0xa8   : > { %714 = vmatpush3.msra.mxu1 %v391_v25 }
 0x159   : > { %v386_v27 = vpop.f32.mrf.mxu0 }
 0x15a   : > { %v387_v28 = vadd.f32 %v630_v26, %v386_v27 }
 0x15b   : > { %v682_v29 = vpop.f32.mrf.mxu0 }
 0x15c   : > { %v390_v30 = vmax.f32 %v387_v28, 0.0 }
 0x15e   : > { %716 = vmatmul.mubr.f32.vlgmr.msra.gmra.mxu1 %v390_v30 }
 0x21e   : > { %v473_v31 = vpop.f32.mrf.mxu1 }
 0x21f   : > { %477 = vst [vmem:[%s299_s20] sm:$0xf] %v473_v31 }
 0x220   : > { %v717_v32 = vpop.f32.mrf.mxu1 }
 0x221   : > { %912 = shalt.err (!%p909_p4)
}
 0x222   : > { %s913_s9 = scalar_lea.hbm %s1287_s26, 64  ;;  %s917_s13 = scalar_lea.hbm %s1331_s4, 256 }
 0x223   : > { %p914_p8 = scmp.ne.s32.totalorder %s1287_s26, %s913_s9  ;;  %p918_p11 = scmp.lt.s32.totalorder %s1287_s26, %s1331_s4 }
 0x224   : > { %p919_p9 = scmp.lt.s32.totalorder %s917_s13, %s913_s9 }
 0x225   : > { %p915_p10 = pnand %p914_p8, %p1360_p3 }
 0x226   : > { %p920_p5 = por %p919_p9, %p918_p11 }
 0x227   : > { %p916_p7 = pneg %p915_p10 }
 0x229   : > { %p921_p2 = pnand %p920_p5, %p916_p7 }
 0x22b   : > { %924 = shalt.err (!%p921_p2)
}
 0x22c   : > { %728 = dma.vmem_to_hbm [thread:$0]  (%p1360_p3), %s1282_s23, 64, %s1287_s26, %s479_s22  }
 0x22d PF: > { %p751_p13 = scmp.ge.s32.totalorder %s971_s18, 2  ;;  %s504_s25 = sand.u32 1, %s959_s15  }
 0x22e   : > { %p1361_p1 = scmp.ne.s32.totalorder %s1350_s5, 0  ;;  %s505_s14 = scalar_lea.sflag [#allocation4], %s504_s25 }
 0x230   : > { %p745_p12 = pnand %p751_p13, %p1361_p1 }
 0x232   : > { %p746_p6 = pneg %p745_p12 }
 0x234   : > { %954 = dma.done.wait (%p746_p6), %s505_s14, 64  }
 0x235   : > { %956 = vsyncadd (%p746_p6), %s505_s14, 4294967232  ;;  %s1362_s30 = sld [smem:[#allocation15_spill]]  ;;  %p21_p0 = scmp.ge.s32.totalorder %s1028_s19, 6  }
 0x236   : > { %s1363_s17 = sld [smem:[#allocation16_spill]]  ;;  %s1364_s15 = smov %s963_s16 }
 0x237   : > { %s1366_s18 = smov %s1028_s19  ;;  %23 = sbr.rel (!%p21_p0) target bundleno = 10 (0xa), region = 110 }
 0x23b   : > { %s1365_s16 = smov %s1362_s30 }
 0x23c   :  { %510 = vsyncpa [#allocation3], 1 }
 0x23d   :  { %512 = vsyncpa [#allocation3 + $0x1], 1 }
 0x23e   :  { %513 = vsyncpa [#allocation6], 1 }
 0x23f   :  { %515 = vsyncpa [#allocation6 + $0x1], 1 }
 0x240   :  { %516 = vsyncpa [#allocation9], 1 }
 0x241   :  { %518 = vsyncpa [#allocation9 + $0x1], 1 }
 0x242   :  { %519 = vsyncpa [#allocation4], 1 }
 0x243   :  { %521 = vsyncpa [#allocation4 + $0x1], 1 }

</bundles_post_ra>
